<compile_context>
chip_gen: v5e
topology: v5e:2x2
jax: 0.10.0
libtpu: 0.0.40
codegen_flags: <defaults>
</compile_context>

<pallas_src>
import functools

import jax
import jax.numpy as jnp
import numpy as np
from jax.experimental import pallas as pl
from jax.experimental.pallas import tpu as pltpu

K1D = (0.05, 0.25, 0.4, 0.25, 0.05)   # separable Gaussian row; K2D = k^T @ k
EPS = 1e-3                            # CharbonnierLoss eps


# ------------------------------------------------------------- static tables ---
def _band_matrix(n):
    """M such that (M @ v)[i] == sum_t K1D[t] * v[clamp(i + t - 2, 0, n-1)].

    Absorbs BOTH the 5-tap Gaussian and the replicate ('edge') padding, so the
    depthwise conv becomes  conv_gauss(img) = M_h @ img @ M_w.T  on the MXU."""
    m = np.zeros((n, n), np.float32)
    for i in range(n):
        for t, w in enumerate(K1D):
            r = min(max(i + t - 2, 0), n - 1)
            m[i, r] += w
    return m


def _parity_mask4(h, w):
    """4.0 at (even row, even col), else 0.0 -- the new_filter[::2, ::2] = 4*down."""
    rows = (np.arange(h) % 2 == 0)[:, None]
    cols = (np.arange(w) % 2 == 0)[None, :]
    return (4.0 * (rows & cols)).astype(np.float32)


# ------------------------------------------------------------------- kernel ---
def _edge_loss_kernel(x_ref, y_ref, a_ref, bt_ref, m4_ref, o_ref, acc_ref, *, inv_n):
    p = pl.program_id(0)

    @pl.when(p == 0)
    def _():
        acc_ref[...] = jnp.zeros_like(acc_ref)

    A = a_ref[...]        # (H, H) vertical band matrix (padding folded in)
    Bt = bt_ref[...]      # (W, W) horizontal band matrix, transposed
    m4 = m4_ref[...]      # (H, W) hoisted 4*even-parity mask

    def conv_gauss(img):
        t = jnp.dot(A, img, precision=jax.lax.Precision.HIGHEST,
                    preferred_element_type=jnp.float32)
        return jnp.dot(t, Bt, precision=jax.lax.Precision.HIGHEST,
                       preferred_element_type=jnp.float32)

    def laplacian(img):
        filtered = conv_gauss(img)
        new_filter = m4 * filtered            # zeros except even rows/cols (x4)
        return img - conv_gauss(new_filter)

    d = laplacian(x_ref[0]) - laplacian(y_ref[0])
    acc_ref[...] += jnp.sqrt(d * d + jnp.float32(EPS * EPS))

    @pl.when(p == pl.num_programs(0) - 1)
    def _():
        o_ref[0, 0] = jnp.sum(acc_ref[...]) * jnp.float32(inv_n)


# ------------------------------------------------------------------ wrapper ---
@jax.jit
def edge_loss(x, y):
    B, C, H, W = x.shape
    P = B * C
    xp = x.reshape(P, H, W).astype(jnp.float32)
    yp = y.reshape(P, H, W).astype(jnp.float32)
    A = jnp.asarray(_band_matrix(H))
    Bt = jnp.asarray(_band_matrix(W).T)
    m4 = jnp.asarray(_parity_mask4(H, W))

    kernel = functools.partial(_edge_loss_kernel, inv_n=1.0 / (P * H * W))

    out = pl.pallas_call(
        kernel,
        out_shape=jax.ShapeDtypeStruct((1, 1), jnp.float32),
        grid_spec=pltpu.PrefetchScalarGridSpec(
            num_scalar_prefetch=0,
            grid=(P,),                                        # one (H, W) plane per step
            in_specs=[
                pl.BlockSpec((1, H, W), lambda p: (p, 0, 0)),  # x plane
                pl.BlockSpec((1, H, W), lambda p: (p, 0, 0)),  # y plane
                pl.BlockSpec((H, H), lambda p: (0, 0)),        # A   (VMEM-resident)
                pl.BlockSpec((W, W), lambda p: (0, 0)),        # B^T (VMEM-resident)
                pl.BlockSpec((H, W), lambda p: (0, 0)),        # 4*even mask (resident)
            ],
            out_specs=pl.BlockSpec((1, 1), lambda p: (0, 0),
                                   memory_space=pltpu.MemorySpace.SMEM),
            scratch_shapes=[pltpu.VMEM((H, W), jnp.float32)],  # elementwise accumulator
        ),
        compiler_params=pltpu.CompilerParams(
            dimension_semantics=("arbitrary",),                # reduction axis
            vmem_limit_bytes=32 * 1024 * 1024,
        ),
    )(xp, yp, A, Bt, m4)
    return out[0, 0]


# ----------------------------------------------------- pure-JAX reference ---
def _ref_conv_gauss(img):
    C = img.shape[1]
    k = jnp.array(K1D, dtype=jnp.float32)[None, :]
    k2d = k.T @ k
    w = jnp.broadcast_to(k2d[None, None], (C, 1, 5, 5))
    pad = jnp.pad(img, ((0, 0), (0, 0), (2, 2), (2, 2)), mode='edge')
    return jax.lax.conv_general_dilated(
        pad, w, (1, 1), 'VALID', feature_group_count=C,
        dimension_numbers=('NCHW', 'OIHW', 'NCHW'),
        precision=jax.lax.Precision.HIGHEST)


def _ref_laplacian(img):
    filtered = _ref_conv_gauss(img)
    H, W = img.shape[2], img.shape[3]
    mask = ((jnp.arange(H) % 2 == 0)[:, None] &
            (jnp.arange(W) % 2 == 0)[None, :])
    new_filter = jnp.where(mask[None, None], 4.0 * filtered, 0.0)
    return img - _ref_conv_gauss(new_filter)


def _ref_edge_loss(x, y):
    d = _ref_laplacian(x) - _ref_laplacian(y)
    return jnp.mean(jnp.sqrt(d * d + EPS * EPS))


# --------------------------------------------------------------------- main ---
if __name__ == "__main__":
    key = jax.random.PRNGKey(0)
    kx, ky = jax.random.split(key)
    B, C, H, W = 2, 4, 16, 16
    x = jax.random.normal(kx, (B, C, H, W), dtype=jnp.float32)
    y = jax.random.normal(ky, (B, C, H, W), dtype=jnp.float32)

    loss = jax.block_until_ready(edge_loss(x, y))
    ref = jax.block_until_ready(_ref_edge_loss(x, y))
    assert jnp.allclose(loss, ref, rtol=1e-4, atol=1e-6), (float(loss), float(ref))
    print("KERNEL_OK")
</pallas_src>

<mosaic_0001>
module attributes {stable_mosaic.version = 11 : i64} {
  func.func @_edge_loss_kernel(%arg0: i32, %arg1: memref<1x16x16xf32, #tpu.memory_space<vmem>>, %arg2: memref<1x16x16xf32, #tpu.memory_space<vmem>>, %arg3: memref<16x16xf32, #tpu.memory_space<vmem>>, %arg4: memref<16x16xf32, #tpu.memory_space<vmem>>, %arg5: memref<16x16xf32, #tpu.memory_space<vmem>>, %arg6: memref<1x1xf32, #tpu.memory_space<smem>>, %arg7: memref<16x16xf32, #tpu.memory_space<vmem>>) attributes {dimension_semantics = [#tpu.dimension_semantics<arbitrary>], iteration_bounds = array<i64: 8>, scalar_prefetch = 0 : i64, scratch_operands = 1 : i64, tpu.core_type = #tpu.core_type<tc>, window_params = [{transform_indices = @transform_0, window_bounds = array<i64: 1, 16, 16>}, {transform_indices = @transform_1, window_bounds = array<i64: 1, 16, 16>}, {pipeline_mode = #tpu.pipeline_mode<synchronous>, transform_indices = @transform_2, window_bounds = array<i64: 16, 16>}, {pipeline_mode = #tpu.pipeline_mode<synchronous>, transform_indices = @transform_3, window_bounds = array<i64: 16, 16>}, {pipeline_mode = #tpu.pipeline_mode<synchronous>, transform_indices = @transform_4, window_bounds = array<i64: 16, 16>}, {transform_indices = @transform_5, window_bounds = array<i64: 1, 1>}]} {
    %c0_i32 = arith.constant 0 : i32
    %0 = arith.cmpi eq, %arg0, %c0_i32 : i32
    %1 = arith.extui %0 : i1 to i32
    %c0_i32_0 = arith.constant 0 : i32
    %2 = arith.cmpi ne, %1, %c0_i32_0 : i32
    scf.if %2 {
      %cst_25 = arith.constant 0.000000e+00 : f32
      %33 = vector.broadcast %cst_25 : f32 to vector<16x16xf32>
      %c0_26 = arith.constant 0 : index
      %c0_27 = arith.constant 0 : index
      %34 = vector.load %arg7[%c0_26, %c0_27] : memref<16x16xf32, #tpu.memory_space<vmem>>, vector<16x16xf32>
      tpu.vector_store %arg7[%c0_26, %c0_27], %33 {strides = array<i32>} : memref<16x16xf32, #tpu.memory_space<vmem>>, vector<16x16xf32>,
    } else {
    }
    %c0 = arith.constant 0 : index
    %c0_1 = arith.constant 0 : index
    %3 = vector.load %arg3[%c0, %c0_1] : memref<16x16xf32, #tpu.memory_space<vmem>>, vector<16x16xf32>
    %c0_2 = arith.constant 0 : index
    %c0_3 = arith.constant 0 : index
    %4 = vector.load %arg4[%c0_2, %c0_3] : memref<16x16xf32, #tpu.memory_space<vmem>>, vector<16x16xf32>
    %c0_4 = arith.constant 0 : index
    %c0_5 = arith.constant 0 : index
    %5 = vector.load %arg5[%c0_4, %c0_5] : memref<16x16xf32, #tpu.memory_space<vmem>>, vector<16x16xf32>
    %c0_6 = arith.constant 0 : index
    %c0_7 = arith.constant 0 : index
    %c0_8 = arith.constant 0 : index
    %6 = vector.load %arg1[%c0_6, %c0_7, %c0_8] : memref<1x16x16xf32, #tpu.memory_space<vmem>>, vector<1x16x16xf32>
    %7 = vector.shape_cast %6 : vector<1x16x16xf32> to vector<16x16xf32>
    %cst = arith.constant dense<0.000000e+00> : vector<16x16xf32>
    %8 = tpu.matmul %3, %7, %cst {dimension_numbers = #tpu.dot_dimension_numbers<[1], [0], [0], [1], [0, 0, 1, 1], [], []>, precision = #tpu.contract_precision<fp32>} : vector<16x16xf32>, vector<16x16xf32>, vector<16x16xf32> -> vector<16x16xf32>
    %cst_9 = arith.constant dense<0.000000e+00> : vector<16x16xf32>
    %9 = tpu.matmul %8, %4, %cst_9 {dimension_numbers = #tpu.dot_dimension_numbers<[1], [0], [0], [1], [0, 0, 1, 1], [], []>, precision = #tpu.contract_precision<fp32>} : vector<16x16xf32>, vector<16x16xf32>, vector<16x16xf32> -> vector<16x16xf32>
    %10 = arith.mulf %5, %9 : vector<16x16xf32>
    %cst_10 = arith.constant dense<0.000000e+00> : vector<16x16xf32>
    %11 = tpu.matmul %3, %10, %cst_10 {dimension_numbers = #tpu.dot_dimension_numbers<[1], [0], [0], [1], [0, 0, 1, 1], [], []>, precision = #tpu.contract_precision<fp32>} : vector<16x16xf32>, vector<16x16xf32>, vector<16x16xf32> -> vector<16x16xf32>
    %cst_11 = arith.constant dense<0.000000e+00> : vector<16x16xf32>
    %12 = tpu.matmul %11, %4, %cst_11 {dimension_numbers = #tpu.dot_dimension_numbers<[1], [0], [0], [1], [0, 0, 1, 1], [], []>, precision = #tpu.contract_precision<fp32>} : vector<16x16xf32>, vector<16x16xf32>, vector<16x16xf32> -> vector<16x16xf32>
    %13 = arith.subf %7, %12 : vector<16x16xf32>
    %c0_12 = arith.constant 0 : index
    %c0_13 = arith.constant 0 : index
    %c0_14 = arith.constant 0 : index
    %14 = vector.load %arg2[%c0_12, %c0_13, %c0_14] : memref<1x16x16xf32, #tpu.memory_space<vmem>>, vector<1x16x16xf32>
    %15 = vector.shape_cast %14 : vector<1x16x16xf32> to vector<16x16xf32>
    %cst_15 = arith.constant dense<0.000000e+00> : vector<16x16xf32>
    %16 = tpu.matmul %3, %15, %cst_15 {dimension_numbers = #tpu.dot_dimension_numbers<[1], [0], [0], [1], [0, 0, 1, 1], [], []>, precision = #tpu.contract_precision<fp32>} : vector<16x16xf32>, vector<16x16xf32>, vector<16x16xf32> -> vector<16x16xf32>
    %cst_16 = arith.constant dense<0.000000e+00> : vector<16x16xf32>
    %17 = tpu.matmul %16, %4, %cst_16 {dimension_numbers = #tpu.dot_dimension_numbers<[1], [0], [0], [1], [0, 0, 1, 1], [], []>, precision = #tpu.contract_precision<fp32>} : vector<16x16xf32>, vector<16x16xf32>, vector<16x16xf32> -> vector<16x16xf32>
    %18 = arith.mulf %5, %17 : vector<16x16xf32>
    %cst_17 = arith.constant dense<0.000000e+00> : vector<16x16xf32>
    %19 = tpu.matmul %3, %18, %cst_17 {dimension_numbers = #tpu.dot_dimension_numbers<[1], [0], [0], [1], [0, 0, 1, 1], [], []>, precision = #tpu.contract_precision<fp32>} : vector<16x16xf32>, vector<16x16xf32>, vector<16x16xf32> -> vector<16x16xf32>
    %cst_18 = arith.constant dense<0.000000e+00> : vector<16x16xf32>
    %20 = tpu.matmul %19, %4, %cst_18 {dimension_numbers = #tpu.dot_dimension_numbers<[1], [0], [0], [1], [0, 0, 1, 1], [], []>, precision = #tpu.contract_precision<fp32>} : vector<16x16xf32>, vector<16x16xf32>, vector<16x16xf32> -> vector<16x16xf32>
    %21 = arith.subf %15, %20 : vector<16x16xf32>
    %22 = arith.subf %13, %21 : vector<16x16xf32>
    %c0_19 = arith.constant 0 : index
    %c0_20 = arith.constant 0 : index
    %23 = vector.load %arg7[%c0_19, %c0_20] : memref<16x16xf32, #tpu.memory_space<vmem>>, vector<16x16xf32>
    %24 = arith.mulf %22, %22 : vector<16x16xf32>
    %cst_21 = arith.constant 9.99999997E-7 : f32
    %25 = vector.broadcast %cst_21 : f32 to vector<16x16xf32>
    %26 = arith.addf %24, %25 : vector<16x16xf32>
    %27 = math.sqrt %26 : vector<16x16xf32>
    %28 = arith.addf %23, %27 : vector<16x16xf32>
    %c0_22 = arith.constant 0 : index
    %c0_23 = arith.constant 0 : index
    %29 = vector.load %arg7[%c0_22, %c0_23] : memref<16x16xf32, #tpu.memory_space<vmem>>, vector<16x16xf32>
    tpu.vector_store %arg7[%c0_22, %c0_23], %28 {strides = array<i32>} : memref<16x16xf32, #tpu.memory_space<vmem>>, vector<16x16xf32>,
    %c7_i32 = arith.constant 7 : i32
    %30 = arith.cmpi eq, %arg0, %c7_i32 : i32
    %31 = arith.extui %30 : i1 to i32
    %c0_i32_24 = arith.constant 0 : i32
    %32 = arith.cmpi ne, %31, %c0_i32_24 : i32
    scf.if %32 {
      %c0_25 = arith.constant 0 : index
      %c0_26 = arith.constant 0 : index
      %33 = vector.load %arg7[%c0_25, %c0_26] : memref<16x16xf32, #tpu.memory_space<vmem>>, vector<16x16xf32>
      %34 = vector.shape_cast %33 : vector<16x16xf32> to vector<1x16x16xf32>
      %cst_27 = arith.constant dense<0.000000e+00> : vector<1xf32>
      %35 = vector.multi_reduction <add>, %34, %cst_27 [1, 2] : vector<1x16x16xf32> to vector<1xf32>
      %36 = vector.shape_cast %35 : vector<1xf32> to vector<1x1x1xf32>
      %37 = vector.extract %36[0, 0, 0] : f32 from vector<1x1x1xf32>
      %cst_28 = arith.constant 4.8828125E-4 : f32
      %38 = arith.mulf %37, %cst_28 : f32
      %c0_29 = arith.constant 0 : index
      %c0_30 = arith.constant 0 : index
      %39 = memref.load %arg6[%c0_29, %c0_30] : memref<1x1xf32, #tpu.memory_space<smem>>
      memref.store %38, %arg6[%c0_29, %c0_30] : memref<1x1xf32, #tpu.memory_space<smem>>
    } else {
    }
    return
  }
  func.func @transform_0(%arg0: i32) -> (i32, i32, i32) {
    %c0_i32 = arith.constant 0 : i32
    %c0_i32_0 = arith.constant 0 : i32
    %c0_i32_1 = arith.constant 0 : i32
    return %arg0, %c0_i32, %c0_i32_0 : i32, i32, i32
  }
  func.func @transform_1(%arg0: i32) -> (i32, i32, i32) {
    %c0_i32 = arith.constant 0 : i32
    %c0_i32_0 = arith.constant 0 : i32
    %c0_i32_1 = arith.constant 0 : i32
    return %arg0, %c0_i32, %c0_i32_0 : i32, i32, i32
  }
  func.func @transform_2(%arg0: i32) -> (i32, i32) {
    %c0_i32 = arith.constant 0 : i32
    %c0_i32_0 = arith.constant 0 : i32
    %c0_i32_1 = arith.constant 0 : i32
    return %c0_i32, %c0_i32_0 : i32, i32
  }
  func.func @transform_3(%arg0: i32) -> (i32, i32) {
    %c0_i32 = arith.constant 0 : i32
    %c0_i32_0 = arith.constant 0 : i32
    %c0_i32_1 = arith.constant 0 : i32
    return %c0_i32, %c0_i32_0 : i32, i32
  }
  func.func @transform_4(%arg0: i32) -> (i32, i32) {
    %c0_i32 = arith.constant 0 : i32
    %c0_i32_0 = arith.constant 0 : i32
    %c0_i32_1 = arith.constant 0 : i32
    return %c0_i32, %c0_i32_0 : i32, i32
  }
  func.func @transform_5(%arg0: i32) -> (i32, i32) {
    %c0_i32 = arith.constant 0 : i32
    %c0_i32_0 = arith.constant 0 : i32
    %c0_i32_1 = arith.constant 0 : i32
    return %c0_i32, %c0_i32_0 : i32, i32
  }
}

</mosaic_0001>

<bundles_post_ra>
// kernel: edge_loss.1
= control target key start
LH: loop header
LB: loop body
LE: loop exit
PB: predicated region body
PF: predicated region fallthrough
CT: control target
= control target key end

     0   :  { %s2804_s0 = inlined_call_operand.hbm [shape: f32[8,16,16], index: 0, kind: input, shape index: {}]   ;;  %s2805_s1 = inlined_call_operand.hbm [shape: f32[8,16,16], index: 1, kind: input, shape index: {}]   ;;  %s2806_s2 = inlined_call_operand.hbm [shape: f32[16,16], index: 2, kind: input, shape index: {}]   ;;  %s2807_s3 = inlined_call_operand.hbm [shape: f32[16,16], index: 3, kind: input, shape index: {}]   ;;  %s2808_s4 = inlined_call_operand.hbm [shape: f32[16,16], index: 4, kind: input, shape index: {}]   ;;  %s2809_s5 = inlined_call_operand.hbm [shape: f32[1,1], index: 5, kind: output, shape index: {}]  }
   0x1   :  { %2812 = sst [smem:[#allocation18_spill]] %s2804_s0 }
   0x2   :  { %10 = vsyncpa [#allocation4], 0 }
   0x3   :  { %12 = vsyncpa [#allocation4 + $0x1], 0 }
   0x4   :  { %13 = vsyncpa [#allocation7], 0 }
   0x5   :  { %15 = vsyncpa [#allocation7 + $0x1], 0 }
   0x6   :  { %16 = vsyncpa [#allocation10], 0 }
   0x7   :  { %17 = vsyncpa [#allocation5], 0  ;;  %s2436_s18 = smov 0   ;;  %s2438_s19 = smov 0  }
   0x8   :  { %s2440_s20 = smov 0   ;;  %s2442_s21 = smov 0  }
   0x9 LB: > { %s2455_s22 = sadd.s32 4294967295, %s2397_s21   ;;  %p43_p0 = scmp.ne.s32.totalorder %s2389_s19, %s2385_s18  ;;  %s2397_s21 = sphi %s2442_s21, %s2823_s21   ;;  %s2393_s20 = sphi %s2440_s20, %s2822_s20   ;;  %s2389_s19 = sphi %s2438_s19, %s2821_s19   ;;  %s2385_s18 = sphi %s2436_s18, %s2820_s18  }
   0xa   : > { %p44_p1 = scmp.eq.s32.totalorder %s2455_s22, 0  ;;  %p2067_p2 = scmp.ge.s32.totalorder %s2397_s21, 1 }
   0xb   : > { %p164_p3 = scmp.lt.s32.totalorder %s2397_s21, 9  ;;  %p2068_p4 = scmp.ne.s32.totalorder %s2455_s22, 0 }
   0xc   : > { %p2464_p5 = por %p44_p1, %p43_p0  ;;  %s175_s26 = sshll.u32 %s2806_s2, 4  ;;  %s176_s26 = int_to_ptr.hbm [resolvable:$true] %s175_s26 }
   0xd   : > { %p2471_p6 = pnand %p2067_p2, %p164_p3  ;;  %s2399_s28 = smov [#allocation8]  }
   0xe   : > { %s177_s29 = sshll.u32 %s2399_s28, 4  ;;  %s189_s8 = sshll.u32 %s2807_s3, 4  ;;  %s178_s29 = int_to_ptr.vmem [resolvable:$true] %s177_s29  ;;  %s190_s8 = int_to_ptr.hbm [resolvable:$true] %s189_s8 }
   0xf   : > { %p2114_p7 = pneg %p2471_p6  ;;  %s2810_s9 = smov 128  }
  0x10   : > { %s2401_s10 = smov 8   ;;  %s2402_s11 = smov [#allocation9]  }
  0x11   : > { %p2479_p8 = pnand %p2114_p7, %p44_p1  ;;  %s191_s12 = sshll.u32 %s2402_s11, 4  ;;  %s192_s12 = int_to_ptr.vmem [resolvable:$true] %s191_s12 }
  0x12   : > { %s203_s15 = sshll.u32 %s2808_s4, 4  ;;  %s2403_s16 = smov [#allocation11]   ;;  %s204_s15 = int_to_ptr.hbm [resolvable:$true] %s203_s15 }
  0x13   : > { %2117 = dma.hbm_to_vmem [thread:$0]  (!%p2479_p8), %s176_s26, 256, %s178_s29, [#allocation7], %s2810_s9, %s2810_s9, %s2401_s10  }
  0x14   : > { %2120 = dma.hbm_to_vmem [thread:$0]  (!%p2479_p8), %s190_s8, 256, %s192_s12, [#allocation10], %s2810_s9, %s2810_s9, %s2401_s10  }
  0x15   : > { %s205_s17 = sshll.u32 %s2403_s16, 4  ;;  %s2500_s18 = sadd.s32 1, %s2397_s21   ;;  %s206_s17 = int_to_ptr.vmem [resolvable:$true] %s205_s17 }
  0x16   : > { %2123 = dma.hbm_to_vmem [thread:$0]  (!%p2479_p8), %s204_s15, 256, %s206_s17, [#allocation10], %s2810_s9, %s2810_s9, %s2401_s10  }
  0x17   : > { %s27_s24 = ssub.s32 %s2397_s21, %s2500_s18  ;;  %s30_s25 = sadd.s32 1, %s2393_s20 }
  0x18   : > { %p28_p9 = scmp.eq.s32.totalorder %s27_s24, 0  ;;  %p37_p10 = scmp.ne.s32.totalorder %s2393_s20, %s2389_s19 }
  0x19   : > { %p38_p11 = scmp.eq.s32.totalorder %s2397_s21, 0  ;;  %p2134_p12 = scmp.lt.s32.totalorder %s2397_s21, 8 }
  0x1a   : > { %s2515_s26 = scalar_select %p28_p9, %s2393_s20, %s30_s25  }
  0x1b   : > { %p39_p13 = por %p38_p11, %p37_p10  ;;  %s219_s28 = sand.u32 1, %s2393_s20  }
  0x1c   : > { %s2518_s29 = sshll.u32 %s219_s28, 4  ;;  %s2090_s6 = sshll.u32 %s2397_s21, 4 }
  0x1d   : > { %s2816_s0 = sld [smem:[#allocation18_spill]]  ;;  %s223_s11 = scalar_lea.vmem [#allocation3], %s2518_s29 }
  0x1e   : > { %s231_s12 = sshll.u32 %s223_s11, 4  ;;  %p2525_p0 = pnand %p2134_p12, %p39_p13  ;;  %s232_s12 = int_to_ptr.vmem [resolvable:$true] %s231_s12 }
  0x1f   : > { %s250_s17 = scalar_lea.hbm %s2805_s1, %s2090_s6  ;;  %s220_s25 = scalar_lea.sflag [#allocation4], %s219_s28 }
  0x20   : > { %s251_s24 = sshll.u32 %s250_s17, 4  ;;  %p2277_p3 = pneg %p2525_p0  ;;  %s252_s24 = int_to_ptr.hbm [resolvable:$true] %s251_s24 }
  0x23   : > { %s228_s8 = scalar_lea.hbm %s2816_s0, %s2090_s6  ;;  %s2280_s11 = scalar_lea.hbm %s2816_s0, 128 }
  0x24   : > { %s229_s13 = sshll.u32 %s228_s8, 4  ;;  %s230_s13 = int_to_ptr.hbm [resolvable:$true] %s229_s13 }
  0x25   : > { %s2273_s9 = sshra.s32 %s230_s13, 4  ;;  %s2274_s9 = int_to_ptr.hbm [resolvable:$true] %s2273_s9 }
  0x26   : > { %s2275_s30 = scalar_lea.hbm %s2274_s9, 16  ;;  %p2281_p9 = scmp.lt.s32.totalorder %s2274_s9, %s2816_s0 }
  0x27   : > { %p2276_p2 = scmp.ne.s32.totalorder %s2274_s9, %s2275_s30  ;;  %p2282_p10 = scmp.lt.s32.totalorder %s2280_s11, %s2275_s30 }
  0x29   : > { %p2278_p7 = pnand %p2277_p3, %p2276_p2  ;;  %p2283_p11 = por %p2282_p10, %p2281_p9 }
  0x2b   : > { %p2279_p8 = pneg %p2278_p7 }
  0x2d   : > { %p2284_p12 = pnand %p2283_p11, %p2279_p8 }
  0x2f   : > { %2287 = shalt.err (!%p2284_p12)
}
  0x30   : > { %s2818_s28 = smov 128   ;;  %s245_s6 = scalar_lea.vmem [#allocation6], %s2518_s29 }
  0x31   : > { %2127 = dma.hbm_to_vmem [thread:$0]  (!%p2525_p0), %s230_s13, 256, %s232_s12, %s220_s25, %s2818_s28, %s2818_s28, %s2401_s10  }
  0x32   : > { %s253_s17 = sshll.u32 %s245_s6, 4  ;;  %s241_s7 = sand.u32 1, %s2397_s21   ;;  %s254_s17 = int_to_ptr.vmem [resolvable:$true] %s253_s17 }
  0x33   : > { %s242_s8 = scalar_lea.sflag [#allocation7], %s241_s7  ;;  %s2303_s9 = sshra.s32 %s252_s24, 4  ;;  %s2304_s9 = int_to_ptr.hbm [resolvable:$true] %s2303_s9 }
  0x34   : > { %s2305_s30 = scalar_lea.hbm %s2304_s9, 16  ;;  %s2310_s16 = scalar_lea.hbm %s2805_s1, 128 }
  0x35   : > { %p2306_p13 = scmp.ne.s32.totalorder %s2304_s9, %s2305_s30  ;;  %p2311_p8 = scmp.lt.s32.totalorder %s2304_s9, %s2805_s1 }
  0x36   : > { %p2312_p9 = scmp.lt.s32.totalorder %s2310_s16, %s2305_s30 }
  0x37   : > { %p2308_p2 = pnand %p2306_p13, %p2277_p3 }
  0x38   : > { %p2313_p10 = por %p2312_p9, %p2311_p8 }
  0x39   : > { %p2309_p7 = pneg %p2308_p2 }
  0x3b   : > { %p2314_p11 = pnand %p2313_p10, %p2309_p7 }
  0x3d   : > { %2317 = shalt.err (!%p2314_p11)
}
  0x3e   : > { %2130 = dma.hbm_to_vmem [thread:$0]  (!%p2525_p0), %s252_s24, 256, %s254_s17, %s242_s8, %s2818_s28, %s2818_s28, %s2401_s10  }
  0x3f   : > { %265 = sbr.rel (%p2471_p6) target bundleno = 1487 (0x5cf), region = 40  ;;  %s267_s21 = sand.u32 (!%p2471_p6), 1, %s2389_s19  }
  0x40   : > { %s2567_s29 = sshll.u32 (!%p2471_p6), %s267_s21, 4  ;;  %s268_s0 = scalar_lea.sflag (!%p2471_p6), [#allocation4], %s267_s21 }
  0x41   : > { %s271_s13 = scalar_lea.vmem (!%p2471_p6), [#allocation3], %s2567_s29 }
  0x44   : > { %2364 = dma.done.wait (%p2464_p5), %s268_s0, 256  }
  0x45   : > { %2366 = vsyncadd (%p2464_p5), %s268_s0, 4294967040  ;;  %s277_s10 = sand.u32 1, %s2455_s22   ;;  %s281_s27 = scalar_lea.vmem [#allocation6], %s2567_s29 }
  0x46   : > { %s278_s14 = scalar_lea.sflag [#allocation7], %s277_s10 }
  0x47   : > { %2368 = dma.done.wait (%p2464_p5), %s278_s14, 256  }
  0x48   : > { %2370 = vsyncadd (%p2464_p5), %s278_s14, 4294967040 }
  0x49   : > { %2372 = dma.done.wait (%p44_p1), [#allocation7], 256  }
  0x4a   : > { %2374 = vsyncadd (%p44_p1), [#allocation7], 4294967040 }
  0x4b   : > { %2376 = dma.done.wait (%p44_p1), [#allocation10], 512  }
  0x4c   : > { %2378 = vsyncadd (%p44_p1), [#allocation10], 4294966784  ;;  %327 = sbr.rel (%p2068_p4) target bundleno = 84 (0x54), region = 64 }
  0x51   : > { %vm328_vm0 = vcmask 130048   ;;  %v2404_v0 = vmov 0.0  }
  0x52   : > { %329 = vst.msk [vmem:[#allocation2] sm:$0xff] %vm328_vm0, %v2404_v0 }
  0x53   : > { %330 = vst.msk [vmem:[#allocation2 + $0x8] sm:$0xff] %vm328_vm0, %v2404_v0 }
  0x54 PF: > { %v2590_v1 = vld [vmem:[%s271_s13 + $0x8] sm:$0xff]  ;;  %v2592_v2 = vld [vmem:[%s271_s13] sm:$0xff]  ;;  %vm339_vm1 = vcmask 130048   ;;  %p2085_p1 = scmp.ne.s32.totalorder %s2455_s22, 7 }
  0x55   : > { %v331_v3 = vld [vmem:[#allocation8] sm:$0xff]  ;;  %v360_v4 = vand.u32 4294901760, %v2590_v1  ;;  %v362_v5 = vand.u32 4294901760, %v2592_v2  ;;  %v332_v7 = vld [vmem:[#allocation8 + $0x8] sm:$0xff]  ;;  %v334_v27 = vld [vmem:[#allocation9 + $0x8] sm:$0xff] }
  0x56   : > { %v341_v6 = vsel %vm339_vm1, %v331_v3, 0  ;;  %v344_v9 = vsel %vm339_vm1, %v332_v7, 0  ;;  %v2636_v28 = vand.u32 4294901760, %v334_v27  ;;  %v333_v29 = vld [vmem:[#allocation9] sm:$0xff] }
  0x57   : > { %v2597_v8 = vand.u32 4294901760, %v341_v6  ;;  %v396_v10 = vsub.f32 %v2590_v1, %v360_v4  ;;  %361 = vmatpush.msra.mxu0 %v360_v4  ;;  %v402_v11 = vsub.f32 %v2592_v2, %v362_v5  ;;  %462 = vmatpush.msra.mxu3 %v360_v4  ;;  %v2602_v12 = vand.u32 4294901760, %v344_v9 }
  0x58   : > { %v2639_v30 = vsub.f32 %v334_v27, %v2636_v28  ;;  %v2641_v31 = vand.u32 4294901760, %v333_v29 }
  0x59   : > { %v2605_v13 = vsub.f32 %v341_v6, %v2597_v8  ;;  %432 = vmatpush.msra.mxu2 %v396_v10  ;;  %363 = vmatpush.msra.mxu0 %v362_v5  ;;  %v397_v14 = vand.u32 4294901760, %v396_v10  ;;  %v403_v15 = vand.u32 4294901760, %v402_v11  ;;  %v2608_v16 = vsub.f32 %v344_v9, %v2602_v12 }
  0x5a   : > { %464 = vmatpush.msra.mxu3 %v362_v5  ;;  %v2646_v32 = vand.u32 4294901760, %v2639_v30  ;;  %v2649_v33 = vsub.f32 %v333_v29, %v2641_v31 }
  0x5b   : > { %v2611_v17 = vand.u32 4294901760, %v2605_v13  ;;  %435 = vmatpush.msra.mxu2 %v402_v11  ;;  %v398_v18 = vsub.f32 %v396_v10, %v397_v14  ;;  %v404_v19 = vsub.f32 %v402_v11, %v403_v15  ;;  %495 = vmatpush.msrb.mxu0 %v397_v14  ;;  %v2618_v21 = vand.u32 4294901760, %v2608_v16 }
  0x5c   : > { %438 = vmatmul.f32.vlgmr.msra.gmra.mxu2 %v2605_v13  ;;  %v594_v34 = vsub.f32 %v2639_v30, %v2646_v32  ;;  %v2657_v35 = vand.u32 4294901760, %v2649_v33 }
  0x5d   : > { %v367_v20 = vsub.f32 %v2605_v13, %v2611_v17  ;;  %468 = vmatmul.f32.vlgmr.msra.gmra.mxu3 %v2611_v17  ;;  %v399_v22 = vand.u32 4294901760, %v398_v18  ;;  %v405_v23 = vand.u32 4294901760, %v404_v19  ;;  %499 = vmatpush.msrb.mxu0 %v403_v15  ;;  %v375_v25 = vsub.f32 %v2608_v16, %v2618_v21 }
  0x5e   : > { %557 = vmatpush.msrb.mxu2 %v2636_v28  ;;  %v2661_v36 = vand.u32 4294901760, %v594_v34  ;;  %v600_v37 = vsub.f32 %v2649_v33, %v2657_v35 }
  0x5f   : > { %v2620_v24 = vand.u32 4294901760, %v367_v20  ;;  %400 = vmatpush.msra.mxu1 %v399_v22  ;;  %v2627_v26 = vand.u32 4294901760, %v375_v25 }
  0x60   : > { %559 = vmatpush.msrb.mxu2 %v2641_v31  ;;  %596 = vmatpush.msrb.mxu3 %v2661_v36  ;;  %v2667_v38 = vand.u32 4294901760, %v600_v37 }
  0x61   : > { %369 = vmatmul.f32.vlgmr.msra.gmra.mxu0 %v2620_v24  ;;  %406 = vmatpush.msra.mxu1 %v405_v23 }
  0x62   : > { %408 = vmatmul.f32.vlgmr.msra.gmra.mxu1 %v2597_v8  ;;  %628 = vmatpush.msra.mxu0 %v2639_v30 }
  0x63   : > { %524 = vmatpush.msrb.mxu1 %v360_v4  ;;  %691 = vmatpush.msra.mxu2 %v2646_v32 }
  0x64   : > { %443 = vmatmul.f32.gmra.mxu2 %v2608_v16  ;;  %631 = vmatpush.msra.mxu0 %v2649_v33 }
  0x65   : > { %474 = vmatmul.f32.gmra.mxu3 %v2618_v21  ;;  %526 = vmatpush.msrb.mxu1 %v362_v5 }
  0x66   : > { %695 = vmatpush.msra.mxu2 %v2657_v35  ;;  %602 = vmatpush.msrb.mxu3 %v2667_v38 }
  0x67   : > { %658 = vmatpush.msra.mxu1 %v2636_v28 }
  0x68   : > { %720 = vmatpush.msra.mxu3 %v2636_v28 }
  0x69   : > { %377 = vmatmul.f32.gmra.mxu0 %v2627_v26  ;;  %660 = vmatpush.msra.mxu1 %v2641_v31 }
  0x6a   : > { %412 = vmatmul.f32.gmra.mxu1 %v2602_v12  ;;  %722 = vmatpush.msra.mxu3 %v2641_v31 }
  0x71   : > { %501 = vmatmul.f32.vlgmr.msrb.gmra.mxu0 %v2597_v8 }
  0x72   : > { %528 = vmatmul.f32.vlgmr.msrb.gmra.mxu1 %v2597_v8 }
  0x79   : > { %505 = vmatmul.f32.gmra.mxu0 %v2602_v12 }
  0x7a   : > { %532 = vmatmul.f32.gmra.mxu1 %v2602_v12 }
  0xde   : > { %v370_v39 = vpop.f32.mrf.mxu0 }
  0xdf   : > { %v409_v40 = vpop.f32.mrf.mxu1  ;;  %v439_v41 = vpop.f32.mrf.mxu2 }
  0xe0   : > { %v410_v42 = vadd.f32 %v409_v40, %v370_v39  ;;  %v469_v44 = vpop.f32.mrf.mxu3 }
  0xe2   : > { %v440_v46 = vadd.f32 %v439_v41, %v410_v42  ;;  %v2674_v41 = vld [vmem:[#allocation11] sm:$0xff] }
  0xe4   : > { %v470_v47 = vadd.f32 %v469_v44, %v440_v46 }
  0xe6   : > { %v378_v43 = vpop.f32.mrf.mxu0 }
  0xe7   : > { %v413_v45 = vpop.f32.mrf.mxu1  ;;  %v444_v49 = vpop.f32.mrf.mxu2 }
  0xe8   : > { %v414_v48 = vadd.f32 %v413_v45, %v378_v43  ;;  %v475_v55 = vpop.f32.mrf.mxu3 }
  0xea   : > { %v445_v53 = vadd.f32 %v444_v49, %v414_v48 }
  0xec   : > { %v476_v58 = vadd.f32 %v475_v55, %v445_v53 }
  0xee   : > { %v502_v50 = vpop.f32.mrf.mxu0 }
  0xef   : > { %v503_v51 = vadd.f32 %v502_v50, %v470_v47  ;;  %v529_v52 = vpop.f32.mrf.mxu1 }
  0xf1   : > { %v530_v54 = vadd.f32 %v529_v52, %v503_v51  ;;  %v2677_v51 = vld [vmem:[#allocation11 + $0x8] sm:$0xff] }
  0xf3   : > { %v537_v56 = vsel %vm339_vm1, %v530_v54, 0 }
  0xf4   : > { %v560_v57 = vand.u32 4294901760, %v537_v56 }
  0xf6   : > { %v561_v59 = vsub.f32 %v537_v56, %v560_v57  ;;  %v506_v60 = vpop.f32.mrf.mxu0  ;;  %604 = vmatmul.f32.vlgmr.msrb.gmra.mxu3 %v560_v57 }
  0xf7   : > { %v507_v61 = vadd.f32 %v506_v60, %v476_v58  ;;  %v533_v62 = vpop.f32.mrf.mxu1 }
  0xf8   : > { %634 = vmatmul.f32.vlgmr.msra.gmra.mxu0 %v561_v59  ;;  %v562_v63 = vand.u32 4294901760, %v561_v59 }
  0xf9   : > { %v534_v0 = vadd.f32 %v533_v62, %v507_v61 }
  0xfa   : > { %664 = vmatmul.f32.vlgmr.msra.gmra.mxu1 %v562_v63  ;;  %v563_v3 = vsub.f32 %v561_v59, %v562_v63 }
  0xfb   : > { %v540_v4 = vsel %vm339_vm1, %v534_v0, 0 }
  0xfc   : > { %v568_v5 = vand.u32 4294901760, %v540_v4  ;;  %v564_v6 = vand.u32 4294901760, %v563_v3 }
  0xfe   : > { %v569_v7 = vsub.f32 %v540_v4, %v568_v5  ;;  %565 = vmatmul.f32.vlgmr.msrb.gmra.mxu2 %v564_v6  ;;  %608 = vmatmul.f32.gmra.mxu3 %v568_v5 }
 0x100   : > { %639 = vmatmul.f32.gmra.mxu0 %v569_v7  ;;  %v570_v9 = vand.u32 4294901760, %v569_v7 }
 0x102   : > { %670 = vmatmul.f32.gmra.mxu1 %v570_v9  ;;  %v571_v10 = vsub.f32 %v569_v7, %v570_v9 }
 0x104   : > { %v572_v11 = vand.u32 4294901760, %v571_v10 }
 0x106   : > { %573 = vmatmul.f32.gmra.mxu2 %v572_v11  ;;  %724 = vmatmul.f32.vlgmr.msra.gmra.mxu3 %v560_v57  ;;  %v2706_v11 = vld [vmem:[%s281_s27 + $0x8] sm:$0xff] }
 0x10e   : > { %697 = vmatmul.f32.vlgmr.msra.gmra.mxu2 %v560_v57  ;;  %728 = vmatmul.f32.gmra.mxu3 %v568_v5 }
 0x116   : > { %701 = vmatmul.f32.gmra.mxu2 %v568_v5 }
 0x175   : > { %v635_v20 = vpop.f32.mrf.mxu0 }
 0x177   : > { %v665_v25 = vpop.f32.mrf.mxu1 }
 0x179   : > { %v605_v14 = vpop.f32.mrf.mxu3 }
 0x17d   : > { %v640_v40 = vpop.f32.mrf.mxu0 }
 0x17f   : > { %v671_v45 = vpop.f32.mrf.mxu1 }
 0x181   : > { %v566_v15 = vpop.f32.mrf.mxu2  ;;  %v609_v18 = vpop.f32.mrf.mxu3 }
 0x182   : > { %v606_v19 = vadd.f32 %v605_v14, %v566_v15  ;;  %v1138_v14 = vand.u32 4294901760, %v2706_v11 }
 0x184   : > { %v636_v23 = vadd.f32 %v635_v20, %v606_v19  ;;  %v2711_v19 = vld [vmem:[%s281_s27] sm:$0xff] }
 0x186   : > { %v666_v29 = vadd.f32 %v665_v25, %v636_v23  ;;  %v1140_v23 = vand.u32 4294901760, %v2711_v19 }
 0x189   : > { %v574_v22 = vpop.f32.mrf.mxu2  ;;  %v725_v34 = vpop.f32.mrf.mxu3 }
 0x18a   : > { %v610_v27 = vadd.f32 %v609_v18, %v574_v22  ;;  %v1174_v22 = vsub.f32 %v2706_v11, %v1138_v14 }
 0x18c   : > { %v641_v42 = vadd.f32 %v640_v40, %v610_v27 }
 0x18e   : > { %v672_v46 = vadd.f32 %v671_v45, %v641_v42 }
 0x191   : > { %v698_v37 = vpop.f32.mrf.mxu2  ;;  %v729_v50 = vpop.f32.mrf.mxu3 }
 0x192   : > { %v699_v39 = vadd.f32 %v698_v37, %v666_v29  ;;  %v1175_v29 = vand.u32 4294901760, %v1174_v22 }
 0x194   : > { %v726_v43 = vadd.f32 %v725_v34, %v699_v39  ;;  %v1180_v34 = vsub.f32 %v2711_v19, %v1140_v23  ;;  %v1176_v42 = vsub.f32 %v1174_v22, %v1175_v29 }
 0x196   : > { %v732_v44 = vmul.f32 %v726_v43, %v2674_v41  ;;  %v1181_v43 = vand.u32 4294901760, %v1180_v34 }
 0x198   : > { %v750_v48 = vand.u32 4294901760, %v732_v44 }
 0x199   : > { %v702_v47 = vpop.f32.mrf.mxu2 }
 0x19a   : > { %v703_v49 = vadd.f32 %v702_v47, %v672_v46  ;;  %v790_v54 = vsub.f32 %v732_v44, %v750_v48  ;;  %v1177_v47 = vand.u32 4294901760, %v1176_v42 }
 0x19c   : > { %v730_v52 = vadd.f32 %v729_v50, %v703_v49  ;;  %v791_v57 = vand.u32 4294901760, %v790_v54 }
 0x19e   : > { %v733_v53 = vmul.f32 %v730_v52, %v2677_v51  ;;  %v792_v60 = vsub.f32 %v790_v54, %v791_v57 }
 0x1a0   : > { %v748_v55 = vand.u32 4294901760, %v733_v53  ;;  %v793_v62 = vand.u32 4294901760, %v792_v60 }
 0x1a2   : > { %v784_v56 = vsub.f32 %v733_v53, %v748_v55  ;;  %749 = vmatpush.msrb.mxu0 %v748_v55  ;;  %850 = vmatpush.msrb.mxu3 %v748_v55 }
 0x1a4   : > { %751 = vmatpush.msrb.mxu0 %v750_v48  ;;  %820 = vmatpush.msrb.mxu2 %v784_v56  ;;  %v785_v58 = vand.u32 4294901760, %v784_v56 }
 0x1a5   : > { %852 = vmatpush.msrb.mxu3 %v750_v48  ;;  %757 = vmatmul.f32.vlgmr.msrb.gmra.mxu0 %v2620_v24 }
 0x1a6   : > { %823 = vmatpush.msrb.mxu2 %v790_v54  ;;  %883 = vmatpush.msra.mxu0 %v785_v58  ;;  %v786_v59 = vsub.f32 %v784_v56, %v785_v58 }
 0x1a7   : > { %826 = vmatmul.f32.vlgmr.msrb.gmra.mxu2 %v2605_v13  ;;  %856 = vmatmul.f32.vlgmr.msrb.gmra.mxu3 %v2611_v17 }
 0x1a8   : > { %887 = vmatpush.msra.mxu0 %v791_v57  ;;  %v787_v61 = vand.u32 4294901760, %v786_v59  ;;  %984 = vmatpush.msra.mxu3 %v2661_v36 }
 0x1a9   : > { %945 = vmatpush.msra.mxu2 %v2636_v28 }
 0x1aa   : > { %1016 = vmatpush.msrb.mxu0 %v2639_v30  ;;  %788 = vmatpush.msrb.mxu1 %v787_v61 }
 0x1ab   : > { %990 = vmatpush.msra.mxu3 %v2667_v38  ;;  %947 = vmatpush.msra.mxu2 %v2641_v31 }
 0x1ac   : > { %1019 = vmatpush.msrb.mxu0 %v2649_v33  ;;  %794 = vmatpush.msrb.mxu1 %v793_v62 }
 0x1ad   : > { %1108 = vmatpush.msrb.mxu3 %v2636_v28  ;;  %765 = vmatmul.f32.gmra.mxu0 %v2627_v26 }
 0x1ae   : > { %796 = vmatmul.f32.vlgmr.msrb.gmra.mxu1 %v2597_v8  ;;  %1079 = vmatpush.msrb.mxu2 %v2646_v32 }
 0x1af   : > { %912 = vmatpush.msra.mxu1 %v748_v55  ;;  %1110 = vmatpush.msrb.mxu3 %v2641_v31 }
 0x1b0   : > { %831 = vmatmul.f32.gmra.mxu2 %v2608_v16  ;;  %862 = vmatmul.f32.gmra.mxu3 %v2618_v21 }
 0x1b1   : > { %914 = vmatpush.msra.mxu1 %v750_v48  ;;  %1083 = vmatpush.msrb.mxu2 %v2657_v35  ;;  %v1182_v48 = vsub.f32 %v1180_v34, %v1181_v43 }
 0x1b3   : > { %1046 = vmatpush.msrb.mxu1 %v2636_v28  ;;  %v1183_v52 = vand.u32 4294901760, %v1182_v48 }
 0x1b5   : > { %1048 = vmatpush.msrb.mxu1 %v2641_v31  ;;  %889 = vmatmul.f32.vlgmr.msra.gmra.mxu0 %v2597_v8 }
 0x1b6   : > { %800 = vmatmul.f32.gmra.mxu1 %v2602_v12  ;;  %1139 = vmatpush.msra.mxu0 %v1138_v14 }
 0x1b8   : > { %1141 = vmatpush.msra.mxu0 %v1140_v23 }
 0x1bd   : > { %893 = vmatmul.f32.gmra.mxu0 %v2602_v12 }
 0x1be   : > { %916 = vmatmul.f32.vlgmr.msra.gmra.mxu1 %v2597_v8 }
 0x1bf   : > { %1178 = vmatpush.msra.mxu1 %v1177_v47 }
 0x1c1   : > { %1184 = vmatpush.msra.mxu1 %v1183_v52 }
 0x1c6   : > { %920 = vmatmul.f32.gmra.mxu1 %v2602_v12 }
 0x222   : > { %v758_v63 = vpop.f32.mrf.mxu0 }
 0x22a   : > { %v766_v0 = vpop.f32.mrf.mxu0  ;;  %v827_v4 = vpop.f32.mrf.mxu2 }
 0x22b   : > { %v797_v3 = vpop.f32.mrf.mxu1  ;;  %v857_v6 = vpop.f32.mrf.mxu3 }
 0x22c   : > { %v798_v5 = vadd.f32 %v797_v3, %v758_v63 }
 0x22e   : > { %v828_v9 = vadd.f32 %v827_v4, %v798_v5 }
 0x230   : > { %v858_v15 = vadd.f32 %v857_v6, %v828_v9 }
 0x232   : > { %v890_v10 = vpop.f32.mrf.mxu0 }
 0x233   : > { %v801_v7 = vpop.f32.mrf.mxu1  ;;  %v832_v20 = vpop.f32.mrf.mxu2  ;;  %v891_v25 = vadd.f32 %v890_v10, %v858_v15 }
 0x234   : > { %v802_v18 = vadd.f32 %v801_v7, %v766_v0  ;;  %v863_v40 = vpop.f32.mrf.mxu3 }
 0x236   : > { %v833_v37 = vadd.f32 %v832_v20, %v802_v18 }
 0x238   : > { %v864_v49 = vadd.f32 %v863_v40, %v833_v37 }
 0x23a   : > { %v894_v45 = vpop.f32.mrf.mxu0 }
 0x23b   : > { %v917_v27 = vpop.f32.mrf.mxu1  ;;  %v895_v53 = vadd.f32 %v894_v45, %v864_v49 }
 0x23c   : > { %v918_v39 = vadd.f32 %v917_v27, %v891_v25 }
 0x23e   : > { %v925_v44 = vsel %vm339_vm1, %v918_v39, 0 }
 0x23f   : > { %v948_v46 = vand.u32 4294901760, %v925_v44 }
 0x241   : > { %v949_v50 = vsub.f32 %v925_v44, %v948_v46  ;;  %992 = vmatmul.f32.vlgmr.msra.gmra.mxu3 %v948_v46 }
 0x242   : > { %1240 = vmatpush.msra.mxu3 %v1138_v14 }
 0x243   : > { %v921_v54 = vpop.f32.mrf.mxu1  ;;  %1022 = vmatmul.f32.vlgmr.msrb.gmra.mxu0 %v949_v50  ;;  %v950_v55 = vand.u32 4294901760, %v949_v50 }
 0x244   : > { %v922_v56 = vadd.f32 %v921_v54, %v895_v53  ;;  %1242 = vmatpush.msra.mxu3 %v1140_v23  ;;  %1273 = vmatpush.msrb.mxu0 %v1175_v29 }
 0x245   : > { %1052 = vmatmul.f32.vlgmr.msrb.gmra.mxu1 %v950_v55  ;;  %v951_v57 = vsub.f32 %v949_v50, %v950_v55 }
 0x246   : > { %v928_v58 = vsel %vm339_vm1, %v922_v56, 0  ;;  %1277 = vmatpush.msrb.mxu0 %v1181_v43  ;;  %1302 = vmatpush.msrb.mxu1 %v1138_v14 }
 0x247   : > { %v956_v59 = vand.u32 4294901760, %v928_v58  ;;  %v952_v60 = vand.u32 4294901760, %v951_v57 }
 0x248   : > { %1304 = vmatpush.msrb.mxu1 %v1140_v23 }
 0x249   : > { %v957_v61 = vsub.f32 %v928_v58, %v956_v59  ;;  %953 = vmatmul.f32.vlgmr.msra.gmra.mxu2 %v952_v60  ;;  %996 = vmatmul.f32.gmra.mxu3 %v956_v59 }
 0x24a   : > { %1210 = vmatpush.msra.mxu2 %v1174_v22 }
 0x24b   : > { %1027 = vmatmul.f32.gmra.mxu0 %v957_v61  ;;  %v958_v62 = vand.u32 4294901760, %v957_v61 }
 0x24c   : > { %1213 = vmatpush.msra.mxu2 %v1180_v34 }
 0x24d   : > { %1058 = vmatmul.f32.gmra.mxu1 %v958_v62  ;;  %v959_v63 = vsub.f32 %v957_v61, %v958_v62 }
 0x24f   : > { %v960_v0 = vand.u32 4294901760, %v959_v63 }
 0x251   : > { %961 = vmatmul.f32.gmra.mxu2 %v960_v0  ;;  %1112 = vmatmul.f32.vlgmr.msrb.gmra.mxu3 %v948_v46 }
 0x252   : > { %1374 = vmatpush.msrb.mxu3 %v2661_v36 }
 0x253   : > { %1147 = vmatmul.f32.vlgmr.msra.gmra.mxu0 %v2620_v24 }
 0x254   : > { %1380 = vmatpush.msrb.mxu3 %v2667_v38  ;;  %1406 = vmatpush.msra.mxu0 %v2639_v30 }
 0x255   : > { %1186 = vmatmul.f32.vlgmr.msra.gmra.mxu1 %v2597_v8 }
 0x256   : > { %1409 = vmatpush.msra.mxu0 %v2649_v33  ;;  %1436 = vmatpush.msra.mxu1 %v2636_v28 }
 0x258   : > { %1438 = vmatpush.msra.mxu1 %v2641_v31 }
 0x259   : > { %1085 = vmatmul.f32.vlgmr.msrb.gmra.mxu2 %v948_v46  ;;  %1116 = vmatmul.f32.gmra.mxu3 %v956_v59 }
 0x25a   : > { %1335 = vmatpush.msrb.mxu2 %v2636_v28 }
 0x25b   : > { %1155 = vmatmul.f32.gmra.mxu0 %v2627_v26 }
 0x25c   : > { %1337 = vmatpush.msrb.mxu2 %v2641_v31 }
 0x25d   : > { %1190 = vmatmul.f32.gmra.mxu1 %v2602_v12 }
 0x261   : > { %1089 = vmatmul.f32.gmra.mxu2 %v956_v59  ;;  %1246 = vmatmul.f32.vlgmr.msra.gmra.mxu3 %v2611_v17 }
 0x262   : > { %1498 = vmatpush.msra.mxu3 %v2636_v28 }
 0x263   : > { %1279 = vmatmul.f32.vlgmr.msrb.gmra.mxu0 %v2597_v8 }
 0x264   : > { %1500 = vmatpush.msra.mxu3 %v2641_v31 }
 0x265   : > { %1306 = vmatmul.f32.vlgmr.msrb.gmra.mxu1 %v2597_v8 }
 0x269   : > { %1216 = vmatmul.f32.vlgmr.msra.gmra.mxu2 %v2605_v13  ;;  %1252 = vmatmul.f32.gmra.mxu3 %v2618_v21 }
 0x26a   : > { %1469 = vmatpush.msra.mxu2 %v2646_v32 }
 0x26b   : > { %1283 = vmatmul.f32.gmra.mxu0 %v2602_v12 }
 0x26c   : > { %1473 = vmatpush.msra.mxu2 %v2657_v35 }
 0x26d   : > { %1310 = vmatmul.f32.gmra.mxu1 %v2602_v12 }
 0x271   : > { %1221 = vmatmul.f32.gmra.mxu2 %v2608_v16 }
 0x2c0   : > { %v1023_v4 = vpop.f32.mrf.mxu0 }
 0x2c2   : > { %v1053_v5 = vpop.f32.mrf.mxu1 }
 0x2c4   : > { %v993_v3 = vpop.f32.mrf.mxu3 }
 0x2c8   : > { %v1028_v14 = vpop.f32.mrf.mxu0 }
 0x2ca   : > { %v1059_v18 = vpop.f32.mrf.mxu1 }
 0x2cc   : > { %v954_v6 = vpop.f32.mrf.mxu2  ;;  %v997_v9 = vpop.f32.mrf.mxu3 }
 0x2cd   : > { %v994_v7 = vadd.f32 %v993_v3, %v954_v6 }
 0x2cf   : > { %v1024_v10 = vadd.f32 %v1023_v4, %v994_v7 }
 0x2d0   : > { %v1148_v27 = vpop.f32.mrf.mxu0 }
 0x2d1   : > { %v1054_v15 = vadd.f32 %v1053_v5, %v1024_v10 }
 0x2d2   : > { %v1187_v37 = vpop.f32.mrf.mxu1 }
 0x2d3   : > { %v1188_v49 = vadd.f32 %v1187_v37, %v1148_v27 }
 0x2d4   : > { %v962_v20 = vpop.f32.mrf.mxu2  ;;  %v1113_v25 = vpop.f32.mrf.mxu3 }
 0x2d5   : > { %v998_v22 = vadd.f32 %v997_v9, %v962_v20 }
 0x2d7   : > { %v1029_v23 = vadd.f32 %v1028_v14, %v998_v22 }
 0x2d8   : > { %v1156_v43 = vpop.f32.mrf.mxu0 }
 0x2d9   : > { %v1060_v29 = vadd.f32 %v1059_v18, %v1029_v23 }
 0x2da   : > { %v1191_v46 = vpop.f32.mrf.mxu1 }
 0x2db   : > { %v1192_v57 = vadd.f32 %v1191_v46, %v1156_v43 }
 0x2dc   : > { %v1086_v34 = vpop.f32.mrf.mxu2  ;;  %v1117_v42 = vpop.f32.mrf.mxu3 }
 0x2dd   : > { %v1087_v39 = vadd.f32 %v1086_v34, %v1054_v15 }
 0x2df   : > { %v2742_v40 = vadd.f32 %v1113_v25, %v1087_v39 }
 0x2e0   : > { %v1280_v52 = vpop.f32.mrf.mxu0 }
 0x2e2   : > { %v1307_v54 = vpop.f32.mrf.mxu1 }
 0x2e4   : > { %v1090_v44 = vpop.f32.mrf.mxu2  ;;  %v1247_v48 = vpop.f32.mrf.mxu3 }
 0x2e5   : > { %v1091_v45 = vadd.f32 %v1090_v44, %v1060_v29 }
 0x2e7   : > { %v2744_v47 = vadd.f32 %v1117_v42, %v1091_v45 }
 0x2e8   : > { %v1284_v0 = vpop.f32.mrf.mxu0 }
 0x2ea   : > { %v1311_v5 = vpop.f32.mrf.mxu1 }
 0x2ec   : > { %v1217_v50 = vpop.f32.mrf.mxu2  ;;  %v1253_v60 = vpop.f32.mrf.mxu3 }
 0x2ed   : > { %v1218_v53 = vadd.f32 %v1217_v50, %v1188_v49 }
 0x2ef   : > { %v1248_v55 = vadd.f32 %v1247_v48, %v1218_v53 }
 0x2f1   : > { %v1281_v56 = vadd.f32 %v1280_v52, %v1248_v55 }
 0x2f3   : > { %v1308_v58 = vadd.f32 %v1307_v54, %v1281_v56 }
 0x2f4   : > { %v1222_v59 = vpop.f32.mrf.mxu2 }
 0x2f5   : > { %v1315_v61 = vsel %vm339_vm1, %v1308_v58, 0  ;;  %v1223_v62 = vadd.f32 %v1222_v59, %v1192_v57 }
 0x2f6   : > { %v1338_v63 = vand.u32 4294901760, %v1315_v61 }
 0x2f7   : > { %v1254_v3 = vadd.f32 %v1253_v60, %v1223_v62 }
 0x2f8   : > { %v1339_v4 = vsub.f32 %v1315_v61, %v1338_v63  ;;  %1382 = vmatmul.f32.vlgmr.msrb.gmra.mxu3 %v1338_v63 }
 0x2f9   : > { %v1285_v6 = vadd.f32 %v1284_v0, %v1254_v3 }
 0x2fa   : > { %1412 = vmatmul.f32.vlgmr.msra.gmra.mxu0 %v1339_v4  ;;  %v1340_v7 = vand.u32 4294901760, %v1339_v4 }
 0x2fb   : > { %v1312_v9 = vadd.f32 %v1311_v5, %v1285_v6 }
 0x2fc   : > { %1442 = vmatmul.f32.vlgmr.msra.gmra.mxu1 %v1340_v7  ;;  %v1341_v10 = vsub.f32 %v1339_v4, %v1340_v7 }
 0x2fd   : > { %v1318_v14 = vsel %vm339_vm1, %v1312_v9, 0 }
 0x2fe   : > { %v1346_v15 = vand.u32 4294901760, %v1318_v14  ;;  %v1342_v18 = vand.u32 4294901760, %v1341_v10 }
 0x300   : > { %v1347_v20 = vsub.f32 %v1318_v14, %v1346_v15  ;;  %1343 = vmatmul.f32.vlgmr.msrb.gmra.mxu2 %v1342_v18  ;;  %1386 = vmatmul.f32.gmra.mxu3 %v1346_v15 }
 0x302   : > { %1417 = vmatmul.f32.gmra.mxu0 %v1347_v20  ;;  %v1348_v22 = vand.u32 4294901760, %v1347_v20 }
 0x304   : > { %1448 = vmatmul.f32.gmra.mxu1 %v1348_v22  ;;  %v1349_v23 = vsub.f32 %v1347_v20, %v1348_v22 }
 0x306   : > { %v1350_v25 = vand.u32 4294901760, %v1349_v23 }
 0x308   : > { %1351 = vmatmul.f32.gmra.mxu2 %v1350_v25  ;;  %1502 = vmatmul.f32.vlgmr.msra.gmra.mxu3 %v1338_v63 }
 0x310   : > { %1475 = vmatmul.f32.vlgmr.msra.gmra.mxu2 %v1338_v63  ;;  %1506 = vmatmul.f32.gmra.mxu3 %v1346_v15 }
 0x318   : > { %1479 = vmatmul.f32.gmra.mxu2 %v1346_v15 }
 0x377   : > { %v1413_v39 = vpop.f32.mrf.mxu0 }
 0x379   : > { %v1443_v44 = vpop.f32.mrf.mxu1 }
 0x37b   : > { %v1383_v27 = vpop.f32.mrf.mxu3 }
 0x37f   : > { %v1418_v52 = vpop.f32.mrf.mxu0 }
 0x381   : > { %v1449_v56 = vpop.f32.mrf.mxu1 }
 0x383   : > { %v1344_v29 = vpop.f32.mrf.mxu2  ;;  %v1387_v34 = vpop.f32.mrf.mxu3 }
 0x384   : > { %v1384_v37 = vadd.f32 %v1383_v27, %v1344_v29 }
 0x386   : > { %v1414_v43 = vadd.f32 %v1413_v39, %v1384_v37 }
 0x388   : > { %v1444_v46 = vadd.f32 %v1443_v44, %v1414_v43 }
 0x38b   : > { %v1352_v42 = vpop.f32.mrf.mxu2  ;;  %v1503_v48 = vpop.f32.mrf.mxu3 }
 0x38c   : > { %v1388_v45 = vadd.f32 %v1387_v34, %v1352_v42 }
 0x38e   : > { %v1419_v53 = vadd.f32 %v1418_v52, %v1388_v45 }
 0x390   : > { %v1450_v57 = vadd.f32 %v1449_v56, %v1419_v53 }
 0x393   : > { %v1476_v49 = vpop.f32.mrf.mxu2  ;;  %v1507_v61 = vpop.f32.mrf.mxu3 }
 0x394   : > { %v1477_v50 = vadd.f32 %v1476_v49, %v1444_v46 }
 0x396   : > { %v1504_v54 = vadd.f32 %v1503_v48, %v1477_v50 }
 0x398   : > { %v1510_v55 = vmul.f32 %v1504_v54, %v2674_v41 }
 0x39a   : > { %v1528_v59 = vand.u32 4294901760, %v1510_v55 }
 0x39b   : > { %v1480_v58 = vpop.f32.mrf.mxu2 }
 0x39c   : > { %v1481_v60 = vadd.f32 %v1480_v58, %v1450_v57  ;;  %v1568_v0 = vsub.f32 %v1510_v55, %v1528_v59 }
 0x39e   : > { %v1508_v62 = vadd.f32 %v1507_v61, %v1481_v60  ;;  %v1569_v5 = vand.u32 4294901760, %v1568_v0 }
 0x3a0   : > { %v1511_v63 = vmul.f32 %v1508_v62, %v2677_v51  ;;  %v1570_v7 = vsub.f32 %v1568_v0, %v1569_v5 }
 0x3a2   : > { %v1526_v3 = vand.u32 4294901760, %v1511_v63  ;;  %v1571_v9 = vand.u32 4294901760, %v1570_v7 }
 0x3a4   : > { %v1562_v4 = vsub.f32 %v1511_v63, %v1526_v3  ;;  %1527 = vmatpush.msrb.mxu0 %v1526_v3  ;;  %1628 = vmatpush.msrb.mxu3 %v1526_v3 }
 0x3a6   : > { %1529 = vmatpush.msrb.mxu0 %v1528_v59  ;;  %1598 = vmatpush.msrb.mxu2 %v1562_v4  ;;  %v1563_v6 = vand.u32 4294901760, %v1562_v4 }
 0x3a7   : > { %1630 = vmatpush.msrb.mxu3 %v1528_v59  ;;  %1535 = vmatmul.f32.vlgmr.msrb.gmra.mxu0 %v2620_v24 }
 0x3a8   : > { %1601 = vmatpush.msrb.mxu2 %v1568_v0  ;;  %1661 = vmatpush.msra.mxu0 %v1563_v6  ;;  %v1564_v41 = vsub.f32 %v1562_v4, %v1563_v6 }
 0x3a9   : > { %1604 = vmatmul.f32.vlgmr.msrb.gmra.mxu2 %v2605_v13  ;;  %1634 = vmatmul.f32.vlgmr.msrb.gmra.mxu3 %v2611_v17 }
 0x3aa   : > { %1665 = vmatpush.msra.mxu0 %v1569_v5  ;;  %v1565_v51 = vand.u32 4294901760, %v1564_v41  ;;  %1762 = vmatpush.msra.mxu3 %v2661_v36 }
 0x3ab   : > { %1723 = vmatpush.msra.mxu2 %v2636_v28 }
 0x3ac   : > { %1794 = vmatpush.msrb.mxu0 %v2639_v30  ;;  %1566 = vmatpush.msrb.mxu1 %v1565_v51 }
 0x3ad   : > { %1768 = vmatpush.msra.mxu3 %v2667_v38  ;;  %1725 = vmatpush.msra.mxu2 %v2641_v31 }
 0x3ae   : > { %1797 = vmatpush.msrb.mxu0 %v2649_v33  ;;  %1572 = vmatpush.msrb.mxu1 %v1571_v9 }
 0x3af   : > { %1886 = vmatpush.msrb.mxu3 %v2636_v28  ;;  %1574 = vmatmul.f32.vlgmr.msrb.gmra.mxu1 %v2597_v8 }
 0x3b0   : > { %1543 = vmatmul.f32.gmra.mxu0 %v2627_v26  ;;  %1690 = vmatpush.msra.mxu1 %v1526_v3  ;;  %v1120_v3 = vsub.f32 %v2592_v2, %v2742_v40 }
 0x3b1   : > { %1888 = vmatpush.msrb.mxu3 %v2641_v31  ;;  %1609 = vmatmul.f32.gmra.mxu2 %v2608_v16 }
 0x3b2   : > { %1640 = vmatmul.f32.gmra.mxu3 %v2618_v21  ;;  %1692 = vmatpush.msra.mxu1 %v1528_v59 }
 0x3b3   : > { %1857 = vmatpush.msrb.mxu2 %v2646_v32 }
 0x3b4   : > { %1824 = vmatpush.msrb.mxu1 %v2636_v28 }
 0x3b5   : > { %1861 = vmatpush.msrb.mxu2 %v2657_v35 }
 0x3b6   : > { %1826 = vmatpush.msrb.mxu1 %v2641_v31 }
 0x3b7   : > { %1578 = vmatmul.f32.gmra.mxu1 %v2602_v12 }
 0x3b8   : > { %1667 = vmatmul.f32.vlgmr.msra.gmra.mxu0 %v2597_v8 }
 0x3bf   : > { %1694 = vmatmul.f32.vlgmr.msra.gmra.mxu1 %v2597_v8 }
 0x3c0   : > { %1671 = vmatmul.f32.gmra.mxu0 %v2602_v12 }
 0x3c7   : > { %1698 = vmatmul.f32.gmra.mxu1 %v2602_v12 }
 0x424   : > { %v1536_v13 = vpop.f32.mrf.mxu0 }
 0x42c   : > { %v1575_v16 = vpop.f32.mrf.mxu1  ;;  %v1605_v21 = vpop.f32.mrf.mxu2 }
 0x42d   : > { %v1544_v17 = vpop.f32.mrf.mxu0  ;;  %v1576_v24 = vadd.f32 %v1575_v16, %v1536_v13  ;;  %v1635_v28 = vpop.f32.mrf.mxu3 }
 0x42f   : > { %v1606_v30 = vadd.f32 %v1605_v21, %v1576_v24  ;;  %v1121_v21 = vsub.f32 %v2590_v1, %v2744_v47 }
 0x431   : > { %v1636_v33 = vadd.f32 %v1635_v28, %v1606_v30 }
 0x434   : > { %v1579_v26 = vpop.f32.mrf.mxu1  ;;  %v1610_v35 = vpop.f32.mrf.mxu2 }
 0x435   : > { %v1668_v32 = vpop.f32.mrf.mxu0  ;;  %v1580_v31 = vadd.f32 %v1579_v26, %v1544_v17  ;;  %v1641_v14 = vpop.f32.mrf.mxu3 }
 0x436   : > { %v1669_v36 = vadd.f32 %v1668_v32, %v1636_v33 }
 0x437   : > { %v1611_v8 = vadd.f32 %v1610_v35, %v1580_v31 }
 0x439   : > { %v1642_v20 = vadd.f32 %v1641_v14, %v1611_v8 }
 0x43c   : > { %v1695_v38 = vpop.f32.mrf.mxu1 }
 0x43d   : > { %v1696_v10 = vadd.f32 %v1695_v38, %v1669_v36  ;;  %v1672_v18 = vpop.f32.mrf.mxu0 }
 0x43e   : > { %v1673_v23 = vadd.f32 %v1672_v18, %v1642_v20 }
 0x43f   : > { %v1703_v15 = vsel %vm339_vm1, %v1696_v10, 0  ;;  %v1902_v10 = vld [vmem:[#allocation2] sm:$0xff] }
 0x440   : > { %v1726_v12 = vand.u32 4294901760, %v1703_v15 }
 0x442   : > { %v1727_v22 = vsub.f32 %v1703_v15, %v1726_v12  ;;  %1770 = vmatmul.f32.vlgmr.msra.gmra.mxu3 %v1726_v12 }
 0x444   : > { %v1699_v25 = vpop.f32.mrf.mxu1  ;;  %1800 = vmatmul.f32.vlgmr.msrb.gmra.mxu0 %v1727_v22  ;;  %v1728_v27 = vand.u32 4294901760, %v1727_v22 }
 0x445   : > { %v1700_v29 = vadd.f32 %v1699_v25, %v1673_v23 }
 0x446   : > { %1830 = vmatmul.f32.vlgmr.msrb.gmra.mxu1 %v1728_v27  ;;  %v1729_v34 = vsub.f32 %v1727_v22, %v1728_v27  ;;  %v1903_v22 = vld [vmem:[#allocation2 + $0x8] sm:$0xff] }
 0x447   : > { %v1706_v37 = vsel %vm339_vm1, %v1700_v29, 0 }
 0x448   : > { %v1734_v39 = vand.u32 4294901760, %v1706_v37  ;;  %v1730_v42 = vand.u32 4294901760, %v1729_v34 }
 0x44a   : > { %v1735_v43 = vsub.f32 %v1706_v37, %v1734_v39  ;;  %1731 = vmatmul.f32.vlgmr.msra.gmra.mxu2 %v1730_v42  ;;  %1774 = vmatmul.f32.gmra.mxu3 %v1734_v39 }
 0x44c   : > { %1805 = vmatmul.f32.gmra.mxu0 %v1735_v43  ;;  %v1736_v44 = vand.u32 4294901760, %v1735_v43 }
 0x44e   : > { %1836 = vmatmul.f32.gmra.mxu1 %v1736_v44  ;;  %v1737_v45 = vsub.f32 %v1735_v43, %v1736_v44 }
 0x450   : > { %v1738_v46 = vand.u32 4294901760, %v1737_v45 }
 0x452   : > { %1739 = vmatmul.f32.gmra.mxu2 %v1738_v46  ;;  %1890 = vmatmul.f32.vlgmr.msrb.gmra.mxu3 %v1726_v12 }
 0x45a   : > { %1863 = vmatmul.f32.vlgmr.msrb.gmra.mxu2 %v1726_v12  ;;  %1894 = vmatmul.f32.gmra.mxu3 %v1734_v39 }
 0x462   : > { %1867 = vmatmul.f32.gmra.mxu2 %v1734_v39 }
 0x4c1   : > { %v1801_v53 = vpop.f32.mrf.mxu0 }
 0x4c3   : > { %v1831_v56 = vpop.f32.mrf.mxu1 }
 0x4c5   : > { %v1771_v48 = vpop.f32.mrf.mxu3 }
 0x4c9   : > { %v1806_v62 = vpop.f32.mrf.mxu0 }
 0x4cb   : > { %v1837_v5 = vpop.f32.mrf.mxu1 }
 0x4cd   : > { %v1732_v49 = vpop.f32.mrf.mxu2  ;;  %v1775_v50 = vpop.f32.mrf.mxu3 }
 0x4ce   : > { %v1772_v52 = vadd.f32 %v1771_v48, %v1732_v49 }
 0x4d0   : > { %v1802_v55 = vadd.f32 %v1801_v53, %v1772_v52 }
 0x4d2   : > { %v1832_v58 = vadd.f32 %v1831_v56, %v1802_v55 }
 0x4d5   : > { %v1740_v54 = vpop.f32.mrf.mxu2  ;;  %v1891_v59 = vpop.f32.mrf.mxu3 }
 0x4d6   : > { %v1776_v57 = vadd.f32 %v1775_v50, %v1740_v54 }
 0x4d8   : > { %v1807_v63 = vadd.f32 %v1806_v62, %v1776_v57 }
 0x4da   : > { %v1838_v41 = vadd.f32 %v1837_v5, %v1807_v63 }
 0x4dd   : > { %v1864_v60 = vpop.f32.mrf.mxu2  ;;  %v1895_v13 = vpop.f32.mrf.mxu3 }
 0x4de   : > { %v1865_v61 = vadd.f32 %v1864_v60, %v1832_v58 }
 0x4e0   : > { %v1892_v0 = vadd.f32 %v1891_v59, %v1865_v61 }
 0x4e2   : > { %v1898_v4 = vsub.f32 %v2711_v19, %v1892_v0 }
 0x4e4   : > { %v1900_v6 = vsub.f32 %v1120_v3, %v1898_v4 }
 0x4e5   : > { %v1868_v7 = vpop.f32.mrf.mxu2 }
 0x4e6   : > { %v1904_v51 = vmul.f32 %v1900_v6, %v1900_v6  ;;  %v1869_v9 = vadd.f32 %v1868_v7, %v1838_v41 }
 0x4e8   : > { %v1906_v16 = vadd.f32 1e-06, %v1904_v51  ;;  %v1896_v17 = vadd.f32 %v1895_v13, %v1869_v9 }
 0x4ea   : > { %2179 = vrsqrt.f32 %v1906_v16  ;;  %v1899_v24 = vsub.f32 %v2706_v11, %v1896_v17  ;;  %vm1915_vm2 = vcmp.eq.f32.partialorder %v1906_v16, inf  ;;  %v1918_v8 = vand.u32 2147483648, %v1906_v16 }
 0x4eb   : > { %vm1917_vm3 = vcmp.eq.f32.partialorder %v1906_v16, 0.0 }
 0x4ec   : > { %v1901_v26 = vsub.f32 %v1121_v21, %v1899_v24 }
 0x4ee   : > { %v1905_v28 = vmul.f32 %v1901_v26, %v1901_v26 }
 0x4f0   : > { %v2180_v2 = vpop.eup %2179  ;;  %v1907_v19 = vadd.f32 1e-06, %v1905_v28 }
 0x4f1   : > { %v1909_v40 = vmul.f32 %v2180_v2, %v1906_v16 }
 0x4f2   : > { %2181 = vrsqrt.f32 %v1907_v19  ;;  %vm1927_vm4 = vcmp.eq.f32.partialorder %v1907_v19, inf  ;;  %v1930_v23 = vand.u32 2147483648, %v1907_v19  ;;  %vm1929_vm5 = vcmp.eq.f32.partialorder %v1907_v19, 0.0 }
 0x4f3   : > { %v1910_v30 = vmul.f32 %v2180_v2, %v1909_v40 }
 0x4f5   : > { %v1911_v32 = vmul.f32 0.5, %v1910_v30 }
 0x4f7   : > { %v1912_v31 = vsub.f32 1.5, %v1911_v32 }
 0x4f8   : > { %v2182_v33 = vpop.eup %2181 }
 0x4f9   : > { %v1913_v35 = vmul.f32 %v2180_v2, %v1912_v31  ;;  %v1921_v36 = vmul.f32 %v2182_v33, %v1907_v19 }
 0x4fb   : > { %v1914_v38 = vmul.f32 %v1913_v35, %v1906_v16  ;;  %v1922_v14 = vmul.f32 %v2182_v33, %v1921_v36 }
 0x4fd   : > { %v1916_v1 = vsel %vm1915_vm2, %v1906_v16, %v1914_v38  ;;  %v1923_v47 = vmul.f32 0.5, %v1922_v14 }
 0x4fe   : > { %v1919_v11 = vsel %vm1917_vm3, %v1918_v8, %v1916_v1 }
 0x4ff   : > { %v1932_v15 = vadd.f32 %v1919_v11, %v1902_v10  ;;  %v1924_v12 = vsub.f32 1.5, %v1923_v47 }
 0x501   : > { %1934 = vst.msk [vmem:[#allocation2] sm:$0xff] %vm339_vm1, %v1932_v15  ;;  %v1925_v18 = vmul.f32 %v2182_v33, %v1924_v12 }
 0x503   : > { %v1926_v20 = vmul.f32 %v1925_v18, %v1907_v19 }
 0x505   : > { %v1928_v25 = vsel %vm1927_vm4, %v1907_v19, %v1926_v20  ;;  %1939 = sbr.rel (%p2085_p1) target bundleno = 1481 (0x5c9), region = 68 }
 0x506   : > { %v1931_v27 = vsel %vm1929_vm5, %v1930_v23, %v1928_v25 }
 0x507   : > { %v1933_v29 = vadd.f32 %v1931_v27, %v1903_v22 }
 0x509   : > { %1935 = vst.msk [vmem:[#allocation2 + $0x8] sm:$0xff] %vm339_vm1, %v1933_v29 }
 0x50a   : > { %v1940_v34 = vld [vmem:[#allocation2] sm:$0xff] }
 0x50b   : > { %v1942_v39 = vsel %vm339_vm1, %v1940_v34, 0.0 }
 0x510   : > { %v1941_v37 = vld [vmem:[#allocation2 + $0x8] sm:$0xff] }
 0x511   : > { %v1943_v42 = vsel %vm339_vm1, %v1941_v37, 0.0 }
 0x512   : > { %v1944_v43 = vadd.f32 %v1943_v42, %v1942_v39 }
 0x514   : > { %1945 = vadd.xlane.f32.xlu0 %v1944_v43 }
 0x587   : > { %v1946_v44 = vpop.xlane.xlu0 %1945 }
 0x588   : > { %v1947_v45 = vrot.slane %v1946_v44, 4 }
 0x58a   : > { %v1948_v46 = vadd.f32 %v1947_v45, %v1946_v44 }
 0x58c   : > { %v1949_v48 = vrot.slane %v1948_v46, 2 }
 0x58e   : > { %v1950_v49 = vadd.f32 %v1949_v48, %v1948_v46 }
 0x590   : > { %v1951_v50 = vrot.slane %v1950_v49, 1 }
 0x592   : > { %v1952_v52 = vadd.f32 %v1951_v50, %v1950_v49 }
 0x594   : > { %2092 = vpush %v1952_v52 }
 0x5c5   : > { %s2093_s23 = spop %2092 }
 0x5c6   : > { %s1954_s24 = smul.f32 0.00048828125, %s2093_s23 }
 0x5c8   : > { %1956 = sst [smem:[#allocation12]] %s1954_s24 }
 0x5c9 PF: > { %p2138_p4 = scmp.eq.s32.totalorder %s2455_s22, 7  ;;  %s1963_s6 = sshll.u32 %s2809_s5, 4  ;;  %s1964_s6 = int_to_ptr.hbm [resolvable:$true] %s1963_s6 }
 0x5ca   : > { %s2405_s17 = smov [#allocation12]  }
 0x5cb   : > { %2111 = dma.smem_to_hbm (%p2138_p4), %s2405_s17, 16, %s1964_s6, [#allocation5]  }
 0x5cc   : > { %2380 = dma.done.wait (%p2138_p4), [#allocation5], 16  }
 0x5cd   : > { %2382 = vsyncadd (%p2138_p4), [#allocation5], 4294967280 }
 0x5ce   : > { %1972 = sfence }
 0x5cf PF: > { %s2819_s7 = smov %s2500_s18  ;;  %p20_p5 = scmp.ge.s32.totalorder %s2500_s18, 10  }
 0x5d0   : > { %s2820_s18 = smov %s2389_s19  ;;  %s2821_s19 = smov %s2393_s20 }
 0x5d1   : > { %s2822_s20 = smov %s2515_s26  ;;  %s2823_s21 = smov %s2819_s7 }
 0x5d2   :  { %22 = sbr.rel (!%p20_p5) target bundleno = 9 (0x9), region = 111 }
 0x5d7   :  { %1978 = vsyncpa [#allocation4], 1 }
 0x5d8   :  { %1980 = vsyncpa [#allocation4 + $0x1], 1 }
 0x5d9   :  { %1981 = vsyncpa [#allocation7], 1 }
 0x5da   :  { %1983 = vsyncpa [#allocation7 + $0x1], 1 }
 0x5db   :  { %1984 = vsyncpa [#allocation10], 1 }
 0x5dc   :  { %1985 = vsyncpa [#allocation5], 1 }
 0x5dd   :  { %1987 = vsyncpa [#allocation5 + $0x1], 1 }

</bundles_post_ra>
